<compile_context>
chip_gen: v5e
topology: v5e:2x2
jax: 0.10.0
libtpu: 0.0.40
codegen_flags: <defaults>
</compile_context>

<pallas_src>
import math

import jax
import jax.numpy as jnp
from jax import lax
from jax.experimental import pallas as pl
from jax.experimental.pallas import tpu as pltpu


def _projection_kernel(x_ref, w_ref, b_ref, o_ref):
    """Fused: matmul -> fold-in input L2 norm -> +bias -> output L2 norm.

    x_ref: (TN, D_IN_P)       raw (un-normalized) input rows, matmul dtype
    w_ref: (D_IN_P, D_OUT_P)  full weight, pre-transposed & pre-cast
    b_ref: (1, D_OUT_P)       bias row, f32 (zeros when the layer has no bias)
    o_ref: (TN, D_OUT_P)      output rows
    """
    x = x_ref[...]

    # Row sum-of-squares with f32 accumulation (padded D_IN lanes are zero).
    xf = x.astype(jnp.float32)
    ssq = jnp.sum(xf * xf, axis=-1, keepdims=True)

    # (x / ||x||) @ W^T + b  ==  (x @ W^T) * rsqrt(sum x^2) + b.
    # Raw (bf16) operands on the MXU, f32 accumulation; the norm scale is
    # applied on the narrow D_OUT side.
    y = jnp.dot(x, w_ref[...], preferred_element_type=jnp.float32)
    y = y * lax.rsqrt(ssq) + b_ref[...]

    # Projection norm (padded D_OUT lanes are exactly zero -> no effect).
    o_ref[...] = (y * lax.rsqrt(jnp.sum(y * y, axis=-1, keepdims=True))
                  ).astype(o_ref.dtype)


def _round_up(v, m):
    return (v + m - 1) // m * m


def _device_defaults():
    """(default_tile_rows, has_megacore) for the attached TPU generation."""
    try:
        kind = jax.devices()[0].device_kind.lower()
    except Exception:
        return 256, True
    if any(t in kind for t in ("v5 lite", "v5e", "v6 lite", "v6e")):
        # Single TensorCore, 128 MiB VMEM: a larger row tile amortizes the
        # ~0.35us/step pipeline overhead; no megacore balancing needed.
        return 512, False
    # v7x (64 MiB VMEM, 2 TensorCores) and unknown chips: smaller tile,
    # balance the row grid across cores.
    return 256, True


def projection_layer(x, weight, bias=None, *, projection=True, norm=True,
                     tile_rows=None, compute_dtype=jnp.bfloat16):
    """JAX wrapper mirroring ProjectionLayer.forward.

    x:      (..., D_IN)
    weight: (D_OUT, D_IN)   -- PyTorch nn.Linear convention
    bias:   (D_OUT,) or None (VisionModel default: proj_bias=False)
    """
    if not projection:
        # norm_modality = bool(projection * norm) is False here -> identity.
        return x

    if not norm:
        # TODO(synk): the fused kernel targets the common projection=True,
        # norm=True configuration; the norm-free path is a plain linear layer.
        y = x @ weight.T
        if bias is not None:
            y = y + bias
        return y

    orig_leading = x.shape[:-1]
    d_in = x.shape[-1]
    d_out = weight.shape[0]
    n = math.prod(orig_leading) if orig_leading else 1
    x2 = x.reshape(n, d_in)
    out_dtype = x.dtype

    act_dtype = jnp.dtype(compute_dtype) if compute_dtype is not None \
        else jnp.dtype(x.dtype)
    sub = 16 if act_dtype.itemsize < 4 else 8     # sublane granule

    default_tile_rows, megacore = _device_defaults()
    if tile_rows is None:
        tile_rows = default_tile_rows
    # (8,128) BlockSpec rule: the row tile must be sublane-aligned.
    tile_rows = max(sub, _round_up(int(tile_rows), sub))

    # --- lane-dense padding (last dims -> multiples of 128) -----------------
    d_in_p = _round_up(d_in, 128)
    d_out_p = _round_up(d_out, 128)

    # --- row tile / grid -----------------------------------------------------
    tn = min(tile_rows, _round_up(n, sub))
    steps = pl.cdiv(n, tn)
    # Balance tiles over the chosen number of steps (less row padding, and on
    # megacore parts a more even per-core split).
    tn = min(tn, _round_up(pl.cdiv(n, steps), sub))
    if megacore:
        steps = pl.cdiv(n, tn)
        if steps == 1 and n >= 4 * sub:
            tn = _round_up(pl.cdiv(n, 2), sub)          # wake the second core
        elif 1 < steps < 8 and steps % 2 == 1:
            tn = _round_up(pl.cdiv(n, steps + 1), sub)  # even grid length

    # --- VMEM budget: shrink tn rather than silently over-cap ---------------
    out_bytes = jnp.dtype(out_dtype).itemsize

    def footprint(rows, w_buffers):
        return (2 * rows * d_in_p * act_dtype.itemsize      # in tile (2 bufs)
                + 2 * rows * d_out_p * out_bytes            # out tile (2 bufs)
                + w_buffers * d_in_p * d_out_p * act_dtype.itemsize
                + w_buffers * d_out_p * 4                   # bias
                + rows * d_in_p * 4                         # f32 x^2 interm.
                + 2 * rows * d_out_p * 4)                   # f32 y interm.

    VMEM_CAP = 48 << 20        # conservative under v7x's 64 MiB physical VMEM
    while footprint(tn, 2) > VMEM_CAP and tn > sub:
        tn = max(sub, _round_up(tn // 2, sub))

    n_p = _round_up(n, tn)
    grid = n_p // tn

    # --- operand prep (in a real model, hoist under jit: weight is static) --
    # TODO(synk): for very large projection weights (>= ~8-16 MiB bf16) or
    # tiny N, stream the weight along a K ("arbitrary") grid axis with an f32
    # accumulator instead of keeping it fully resident; unnecessary at these
    # projection-head sizes.
    w_t = weight.astype(act_dtype).T
    w_t = jnp.pad(w_t, ((0, d_in_p - d_in), (0, d_out_p - d_out)))

    b_row = jnp.zeros((1, d_out_p), jnp.float32)
    if bias is not None:
        b_row = b_row.at[0, :d_out].set(bias.astype(jnp.float32))

    x2p = x2
    if n_p != n or d_in_p != d_in:
        # Padded D_IN columns are zero (no effect on matmul / row norms).
        # Padded rows are all-zero -> NaN rows (0 * rsqrt(0)); row-independent
        # and sliced off below.
        x2p = jnp.pad(x2, ((0, n_p - n), (0, d_in_p - d_in)))
    x2p = x2p.astype(act_dtype)   # halves the per-step input DMA vs f32

    def const_spec(shape, single_buffer):
        index_map = lambda i: (0,) * len(shape)
        if single_buffer:
            # Block index never changes -> one resident buffer is enough;
            # default double-buffering would waste a full extra weight copy.
            return pl.BlockSpec(shape, index_map, pipeline_mode=pl.Buffered(1))
        return pl.BlockSpec(shape, index_map)

    def run(single_buffer_consts):
        w_buffers = 1 if single_buffer_consts else 2
        vmem_limit = int(min(max(footprint(tn, w_buffers) + (8 << 20),
                                 32 << 20), 56 << 20))
        return pl.pallas_call(
            _projection_kernel,
            out_shape=jax.ShapeDtypeStruct((n_p, d_out_p), out_dtype),
            grid_spec=pltpu.PrefetchScalarGridSpec(
                num_scalar_prefetch=0,
                grid=(grid,),
                in_specs=[
                    pl.BlockSpec((tn, d_in_p), lambda i: (i, 0)),
                    const_spec((d_in_p, d_out_p), single_buffer_consts),
                    const_spec((1, d_out_p), single_buffer_consts),
                ],
                out_specs=pl.BlockSpec((tn, d_out_p), lambda i: (i, 0)),
            ),
            compiler_params=pltpu.CompilerParams(
                dimension_semantics=("parallel",),   # rows shard across cores
                vmem_limit_bytes=vmem_limit,
            ),
        )(x2p, w_t, b_row)

    try:
        out = run(True)
    except Exception:
        # TODO(synk): pl.Buffered(1) single-buffering unsupported on this jax
        # version; fall back to default double-buffered constant operands.
        out = run(False)

    out = out[:n, :d_out]
    return out.reshape(*orig_leading, d_out)


def _reference(x, weight, bias):
    xn = x / jnp.linalg.norm(x, axis=-1, keepdims=True)
    y = xn @ weight.T
    if bias is not None:
        y = y + bias
    return y / jnp.linalg.norm(y, axis=-1, keepdims=True)


if __name__ == "__main__":
    key = jax.random.PRNGKey(0)
    k1, k2, k3, k4, k5, k6 = jax.random.split(key, 6)

    # --- Test 1: VisionModel-style head (backbone embed -> projection) ------
    B, VDIM, PDIM = 16, 256, 128
    embed = jax.random.normal(k1, (B, VDIM), dtype=jnp.float32)
    w1 = jax.random.normal(k2, (PDIM, VDIM), dtype=jnp.float32) * 0.05
    out1 = jax.block_until_ready(projection_layer(embed, w1, None))
    ref1 = _reference(embed, w1, None)
    assert out1.shape == (B, PDIM), out1.shape
    assert jnp.allclose(out1, ref1, atol=2e-2, rtol=2e-2), "test1 mismatch"

    # --- Test 2: ragged dims exercising lane/row padding, with bias ---------
    x2 = jax.random.normal(k3, (2, 8, 200), dtype=jnp.float32)
    w2 = jax.random.normal(k4, (96, 200), dtype=jnp.float32) * 0.05
    bias2 = jax.random.normal(k5, (96,), dtype=jnp.float32) * 0.01
    out2 = jax.block_until_ready(projection_layer(x2, w2, bias2))
    ref2 = _reference(x2, w2, bias2)
    assert out2.shape == (2, 8, 96), out2.shape
    assert jnp.allclose(out2, ref2, atol=2e-2, rtol=2e-2), "test2 mismatch"

    # --- Test 3: several grid steps (row count not a tile multiple) ---------
    x3 = jax.random.normal(k6, (3, 200, 256), dtype=jnp.float32)  # 600 rows
    out3 = jax.block_until_ready(projection_layer(x3, w1, None))
    ref3 = _reference(x3, w1, None)
    assert out3.shape == (3, 200, 128), out3.shape
    assert jnp.allclose(out3, ref3, atol=2e-2, rtol=2e-2), "test3 mismatch"
    assert bool(jnp.isfinite(out3).all()), "padded NaN rows leaked into output"

    print("KERNEL_OK")
</pallas_src>

<mosaic_0001>
module attributes {stable_mosaic.version = 11 : i64} {
  func.func @_projection_kernel(%arg0: i32, %arg1: memref<16x256xbf16, #tpu.memory_space<vmem>>, %arg2: memref<256x128xbf16, #tpu.memory_space<vmem>>, %arg3: memref<1x128xf32, #tpu.memory_space<vmem>>, %arg4: memref<16x128xf32, #tpu.memory_space<vmem>>) attributes {dimension_semantics = [#tpu.dimension_semantics<parallel>], iteration_bounds = array<i64: 1>, scalar_prefetch = 0 : i64, scratch_operands = 0 : i64, tpu.core_type = #tpu.core_type<tc>, window_params = [{transform_indices = @transform_0, window_bounds = array<i64: 16, 256>}, {pipeline_mode = #tpu.pipeline_mode<synchronous>, transform_indices = @transform_1, window_bounds = array<i64: 256, 128>}, {pipeline_mode = #tpu.pipeline_mode<synchronous>, transform_indices = @transform_2, window_bounds = array<i64: 1, 128>}, {transform_indices = @transform_3, window_bounds = array<i64: 16, 128>}]} {
    %c0 = arith.constant 0 : index
    %c0_0 = arith.constant 0 : index
    %0 = vector.load %arg1[%c0, %c0_0] : memref<16x256xbf16, #tpu.memory_space<vmem>>, vector<16x256xbf16>
    %1 = arith.extf %0 : vector<16x256xbf16> to vector<16x256xf32>
    %2 = arith.mulf %1, %1 : vector<16x256xf32>
    %cst = arith.constant dense<0.000000e+00> : vector<16xf32>
    %3 = vector.multi_reduction <add>, %2, %cst [1] : vector<16x256xf32> to vector<16xf32>
    %4 = vector.shape_cast %3 : vector<16xf32> to vector<16x1xf32>
    %c0_1 = arith.constant 0 : index
    %c0_2 = arith.constant 0 : index
    %5 = vector.load %arg2[%c0_1, %c0_2] : memref<256x128xbf16, #tpu.memory_space<vmem>>, vector<256x128xbf16>
    %cst_3 = arith.constant dense<0.000000e+00> : vector<16x128xf32>
    %6 = tpu.matmul %0, %5, %cst_3 {dimension_numbers = #tpu.dot_dimension_numbers<[1], [0], [0], [1], [0, 0, 1, 1], [], []>} : vector<16x256xbf16>, vector<256x128xbf16>, vector<16x128xf32> -> vector<16x128xf32>
    %7 = math.rsqrt %4 : vector<16x1xf32>
    %8 = vector.broadcast %7 : vector<16x1xf32> to vector<16x128xf32>
    %9 = arith.mulf %6, %8 : vector<16x128xf32>
    %c0_4 = arith.constant 0 : index
    %c0_5 = arith.constant 0 : index
    %10 = vector.load %arg3[%c0_4, %c0_5] : memref<1x128xf32, #tpu.memory_space<vmem>>, vector<1x128xf32>
    %11 = vector.broadcast %10 : vector<1x128xf32> to vector<16x128xf32>
    %12 = arith.addf %9, %11 : vector<16x128xf32>
    %13 = arith.mulf %12, %12 : vector<16x128xf32>
    %cst_6 = arith.constant dense<0.000000e+00> : vector<16xf32>
    %14 = vector.multi_reduction <add>, %13, %cst_6 [1] : vector<16x128xf32> to vector<16xf32>
    %15 = vector.shape_cast %14 : vector<16xf32> to vector<16x1xf32>
    %16 = math.rsqrt %15 : vector<16x1xf32>
    %17 = vector.broadcast %16 : vector<16x1xf32> to vector<16x128xf32>
    %18 = arith.mulf %12, %17 : vector<16x128xf32>
    %c0_7 = arith.constant 0 : index
    %c0_8 = arith.constant 0 : index
    %19 = vector.load %arg4[%c0_7, %c0_8] : memref<16x128xf32, #tpu.memory_space<vmem>>, vector<16x128xf32>
    tpu.vector_store %arg4[%c0_7, %c0_8], %18 {strides = array<i32>} : memref<16x128xf32, #tpu.memory_space<vmem>>, vector<16x128xf32>,
    return
  }
  func.func @transform_0(%arg0: i32) -> (i32, i32) {
    %c0_i32 = arith.constant 0 : i32
    %c0_i32_0 = arith.constant 0 : i32
    return %arg0, %c0_i32 : i32, i32
  }
  func.func @transform_1(%arg0: i32) -> (i32, i32) {
    %c0_i32 = arith.constant 0 : i32
    %c0_i32_0 = arith.constant 0 : i32
    %c0_i32_1 = arith.constant 0 : i32
    return %c0_i32, %c0_i32_0 : i32, i32
  }
  func.func @transform_2(%arg0: i32) -> (i32, i32) {
    %c0_i32 = arith.constant 0 : i32
    %c0_i32_0 = arith.constant 0 : i32
    %c0_i32_1 = arith.constant 0 : i32
    return %c0_i32, %c0_i32_0 : i32, i32
  }
  func.func @transform_3(%arg0: i32) -> (i32, i32) {
    %c0_i32 = arith.constant 0 : i32
    %c0_i32_0 = arith.constant 0 : i32
    return %arg0, %c0_i32 : i32, i32
  }
}

module attributes {stable_mosaic.version = 11 : i64} {
  func.func @_projection_kernel(%arg0: i32, %arg1: memref<16x256xbf16, #tpu.memory_space<vmem>>, %arg2: memref<256x128xbf16, #tpu.memory_space<vmem>>, %arg3: memref<1x128xf32, #tpu.memory_space<vmem>>, %arg4: memref<16x128xf32, #tpu.memory_space<vmem>>) attributes {dimension_semantics = [#tpu.dimension_semantics<parallel>], iteration_bounds = array<i64: 1>, scalar_prefetch = 0 : i64, scratch_operands = 0 : i64, tpu.core_type = #tpu.core_type<tc>, window_params = [{transform_indices = @transform_0, window_bounds = array<i64: 16, 256>}, {pipeline_mode = #tpu.pipeline_mode<synchronous>, transform_indices = @transform_1, window_bounds = array<i64: 256, 128>}, {pipeline_mode = #tpu.pipeline_mode<synchronous>, transform_indices = @transform_2, window_bounds = array<i64: 1, 128>}, {transform_indices = @transform_3, window_bounds = array<i64: 16, 128>}]} {
    %c0 = arith.constant 0 : index
    %c0_0 = arith.constant 0 : index
    %0 = vector.load %arg1[%c0, %c0_0] : memref<16x256xbf16, #tpu.memory_space<vmem>>, vector<16x256xbf16>
    %1 = arith.extf %0 : vector<16x256xbf16> to vector<16x256xf32>
    %2 = arith.mulf %1, %1 : vector<16x256xf32>
    %cst = arith.constant dense<0.000000e+00> : vector<16xf32>
    %3 = vector.multi_reduction <add>, %2, %cst [1] : vector<16x256xf32> to vector<16xf32>
    %4 = vector.shape_cast %3 : vector<16xf32> to vector<16x1xf32>
    %c0_1 = arith.constant 0 : index
    %c0_2 = arith.constant 0 : index
    %5 = vector.load %arg2[%c0_1, %c0_2] : memref<256x128xbf16, #tpu.memory_space<vmem>>, vector<256x128xbf16>
    %cst_3 = arith.constant dense<0.000000e+00> : vector<16x128xf32>
    %6 = tpu.matmul %0, %5, %cst_3 {dimension_numbers = #tpu.dot_dimension_numbers<[1], [0], [0], [1], [0, 0, 1, 1], [], []>} : vector<16x256xbf16>, vector<256x128xbf16>, vector<16x128xf32> -> vector<16x128xf32>
    %7 = math.rsqrt %4 : vector<16x1xf32>
    %8 = vector.broadcast %7 : vector<16x1xf32> to vector<16x128xf32>
    %9 = arith.mulf %6, %8 : vector<16x128xf32>
    %c0_4 = arith.constant 0 : index
    %c0_5 = arith.constant 0 : index
    %10 = vector.load %arg3[%c0_4, %c0_5] : memref<1x128xf32, #tpu.memory_space<vmem>>, vector<1x128xf32>
    %11 = vector.broadcast %10 : vector<1x128xf32> to vector<16x128xf32>
    %12 = arith.addf %9, %11 : vector<16x128xf32>
    %13 = arith.mulf %12, %12 : vector<16x128xf32>
    %cst_6 = arith.constant dense<0.000000e+00> : vector<16xf32>
    %14 = vector.multi_reduction <add>, %13, %cst_6 [1] : vector<16x128xf32> to vector<16xf32>
    %15 = vector.shape_cast %14 : vector<16xf32> to vector<16x1xf32>
    %16 = math.rsqrt %15 : vector<16x1xf32>
    %17 = vector.broadcast %16 : vector<16x1xf32> to vector<16x128xf32>
    %18 = arith.mulf %12, %17 : vector<16x128xf32>
    %c0_7 = arith.constant 0 : index
    %c0_8 = arith.constant 0 : index
    %19 = vector.load %arg4[%c0_7, %c0_8] : memref<16x128xf32, #tpu.memory_space<vmem>>, vector<16x128xf32>
    tpu.vector_store %arg4[%c0_7, %c0_8], %18 {strides = array<i32>} : memref<16x128xf32, #tpu.memory_space<vmem>>, vector<16x128xf32>,
    return
  }
  func.func @transform_0(%arg0: i32) -> (i32, i32) {
    %c0_i32 = arith.constant 0 : i32
    %c0_i32_0 = arith.constant 0 : i32
    return %arg0, %c0_i32 : i32, i32
  }
  func.func @transform_1(%arg0: i32) -> (i32, i32) {
    %c0_i32 = arith.constant 0 : i32
    %c0_i32_0 = arith.constant 0 : i32
    %c0_i32_1 = arith.constant 0 : i32
    return %c0_i32, %c0_i32_0 : i32, i32
  }
  func.func @transform_2(%arg0: i32) -> (i32, i32) {
    %c0_i32 = arith.constant 0 : i32
    %c0_i32_0 = arith.constant 0 : i32
    %c0_i32_1 = arith.constant 0 : i32
    return %c0_i32, %c0_i32_0 : i32, i32
  }
  func.func @transform_3(%arg0: i32) -> (i32, i32) {
    %c0_i32 = arith.constant 0 : i32
    %c0_i32_0 = arith.constant 0 : i32
    return %arg0, %c0_i32 : i32, i32
  }
}

</mosaic_0001>

<bundles_post_ra>
// kernel: tpu_custom_call.1
= control target key start
LH: loop header
LB: loop body
LE: loop exit
PB: predicated region body
PF: predicated region fallthrough
CT: control target
= control target key end

     0   :  { %8 = vsyncpa [#allocation3], 0  ;;  %s536_s0 = inlined_call_operand.hbm [shape: bf16[16,256], index: 0, kind: input, shape index: {}]   ;;  %s537_s1 = inlined_call_operand.hbm [shape: bf16[256,128], index: 1, kind: input, shape index: {}]   ;;  %s538_s2 = inlined_call_operand.vmem [shape: f32[1,128], index: 2, kind: input, shape index: {}]   ;;  %s539_s3 = inlined_call_operand.hbm [shape: f32[16,128], index: 3, kind: output, shape index: {}]  }
   0x1   :  { %9 = vsyncpa [#allocation6], 0 }
   0x2   :  { %10 = vsyncpa [#allocation4], 0  ;;  %s15_s14 = sshll.u32 %s536_s0, 4  ;;  %s491_s15 = smov [#allocation2]   ;;  %s16_s14 = int_to_ptr.hbm [resolvable:$true] %s15_s14 }
   0x3   :  { %s17_s16 = sshll.u32 %s491_s15, 4  ;;  %s28_s19 = sshll.u32 %s537_s1, 4  ;;  %s18_s16 = int_to_ptr.vmem [resolvable:$true] %s17_s16  ;;  %s29_s19 = int_to_ptr.hbm [resolvable:$true] %s28_s19 }
   0x4   :  { %s492_s20 = smov 128   ;;  %s493_s21 = smov 8  }
   0x5   :  { %23 = dma.hbm_to_vmem [thread:$0]  %s16_s14, 256, %s18_s16, [#allocation3], %s492_s20, %s492_s20, %s493_s21  }
   0x6   :  { %s494_s22 = smov [#allocation5]   ;;  %s495_s24 = smov 64  }
   0x7   :  { %s30_s23 = sshll.u32 %s494_s22, 4  ;;  %s496_s0 = smov 4   ;;  %s31_s23 = int_to_ptr.vmem [resolvable:$true] %s30_s23 }
   0x8   :  { %36 = dma.hbm_to_vmem [thread:$0]  %s29_s19, 2048, %s31_s23, [#allocation6], %s495_s24, %s495_s24, %s496_s0  }
   0x9   :  { %485 = dma.done.wait [#allocation3], 256  }
   0xa   :  { %486 = vsyncadd [#allocation3], 4294967040 }
   0xb   :  { %487 = dma.done.wait [#allocation6], 2048  }
   0xc   :  { %488 = vsyncadd [#allocation6], 4294965248  ;;  %v388_v0 = vld [vmem:[#allocation5 + $0x38] sm:$0xff]  ;;  %v387_v2 = vld [vmem:[#allocation5 + $0x30] sm:$0xff]  ;;  %s293_s29 = sshll.u32 %s539_s3, 4  ;;  %s294_s29 = int_to_ptr.hbm [resolvable:$true] %s293_s29 }
   0xd   :  { %v396_v1 = vld [vmem:[#allocation5 + $0x78] sm:$0xff]  ;;  %201 = vmatpush.bf16.msra.mxu0 %v388_v0  ;;  %v395_v3 = vld [vmem:[#allocation5 + $0x70] sm:$0xff]  ;;  %v386_v12 = vld [vmem:[#allocation5 + $0x28] sm:$0xff] }
   0xe   :  { %215 = vmatpush.bf16.msra.mxu1 %v396_v1  ;;  %v47_v4 = vld [vmem:[#allocation2] sm:$0xff]  ;;  %v48_v7 = vld [vmem:[#allocation2 + $0x8] sm:$0xff]  ;;  %v394_v13 = vld [vmem:[#allocation5 + $0x68] sm:$0xff] }
   0xf   :  { %v49_v5 = vunpack.c.l.bf16 %v47_v4  ;;  %v50_v6 = vunpack.c.h.bf16 %v47_v4  ;;  %v51_v10 = vunpack.c.l.bf16 %v48_v7  ;;  %v52_v11 = vunpack.c.h.bf16 %v48_v7  ;;  %v385_v17 = vld [vmem:[#allocation5 + $0x20] sm:$0xff]  ;;  %v384_v20 = vld [vmem:[#allocation5 + $0x18] sm:$0xff]  ;;  %v383_v22 = vld [vmem:[#allocation5 + $0x10] sm:$0xff] }
  0x10   :  { %v393_v18 = vld [vmem:[#allocation5 + $0x60] sm:$0xff]  ;;  %v392_v21 = vld [vmem:[#allocation5 + $0x58] sm:$0xff]  ;;  %v391_v23 = vld [vmem:[#allocation5 + $0x50] sm:$0xff] }
  0x11   :  { %v53_v8 = vmul.f32 %v49_v5, %v49_v5  ;;  %v54_v9 = vmul.f32 %v50_v6, %v50_v6  ;;  %202 = vmatpush.bf16.msra.mxu0 %v387_v2  ;;  %v55_v15 = vmul.f32 %v51_v10, %v51_v10  ;;  %v56_v16 = vmul.f32 %v52_v11, %v52_v11  ;;  %v382_v24 = vld [vmem:[#allocation5 + $0x8] sm:$0xff]  ;;  %v381_v26 = vld [vmem:[#allocation5] sm:$0xff]  ;;  %v309_v28 = vld [vmem:[#allocation2] sm:$0xf] }
  0x12   :  { %216 = vmatpush.bf16.msra.mxu1 %v395_v3  ;;  %v390_v25 = vld [vmem:[#allocation5 + $0x48] sm:$0xff]  ;;  %v389_v27 = vld [vmem:[#allocation5 + $0x40] sm:$0xff]  ;;  %v380_v29 = vld [vmem:[#allocation2 + $0x4] sm:$0xf0] }
  0x13   :  { %v57_v14 = vadd.f32 %v54_v9, %v53_v8  ;;  %v60_v19 = vadd.f32 %v56_v16, %v55_v15  ;;  %v379_v30 = vld [vmem:[#allocation2 + $0x4] sm:$0xf]  ;;  %v311_v31 = vld [vmem:[#allocation2 + $0x8] sm:$0xf0]  ;;  %v310_v32 = vor.u32 %v380_v29, %v309_v28  ;;  %v404_v49 = vld [vmem:[%s538_s2] ss:$0 sm:$0xff] }
  0x14   :  { %v314_v33 = vor.u32 %v379_v30, %v311_v31  ;;  %s497_s2 = smov [#allocation7]  }
  0x15   :  { %58 = vadd.xlane.f32.xlu0 %v57_v14  ;;  %203 = vmatpush.bf16.msra.mxu0 %v386_v12  ;;  %s291_s26 = sshll.u32 %s497_s2, 4  ;;  %s292_s26 = int_to_ptr.vmem [resolvable:$true] %s291_s26 }
  0x16   :  { %217 = vmatpush.bf16.msra.mxu1 %v394_v13 }
  0x19   :  { %204 = vmatpush.bf16.msra.mxu0 %v385_v17 }
  0x1a   :  { %218 = vmatpush.bf16.msra.mxu1 %v393_v18 }
  0x1d   :  { %61 = vadd.xlane.f32.xlu0 %v60_v19  ;;  %205 = vmatpush.bf16.msra.mxu0 %v384_v20 }
  0x1e   :  { %219 = vmatpush.bf16.msra.mxu1 %v392_v21 }
  0x21   :  { %206 = vmatpush.bf16.msra.mxu0 %v383_v22 }
  0x22   :  { %220 = vmatpush.bf16.msra.mxu1 %v391_v23 }
  0x25   :  { %207 = vmatpush.bf16.msra.mxu0 %v382_v24 }
  0x26   :  { %221 = vmatpush.bf16.msra.mxu1 %v390_v25 }
  0x29   :  { %208 = vmatpush.bf16.msra.mxu0 %v381_v26 }
  0x2a   :  { %222 = vmatpush.bf16.msra.mxu1 %v389_v27 }
  0x2c   :  { %209 = vmatmul.bf16.vlgmr.msra.gmra.mxu0 %v310_v32 }
  0x2d   :  { %223 = vmatmul.bf16.vlgmr.msra.gmra.mxu1 %v314_v33 }
  0x88   :  { %v59_v34 = vpop.xlane.xlu0 %58 }
  0x89   :  { %405 = vrsqrt.f32 %v59_v34  ;;  %vm235_vm0 = vweird.f32 %v59_v34 }
  0x8f   :  { %v406_v36 = vpop.eup %405 }
  0x90   :  { %v62_v35 = vpop.xlane.xlu0 %61  ;;  %v230_v37 = vmul.f32 %v406_v36, %v59_v34  ;;  %vm236_vm1 = vweird.f32 %v406_v36 }
  0x91   :  { %407 = vrsqrt.f32 %v62_v35  ;;  %vm237_vm2 = vmor %vm235_vm0, %vm236_vm1  ;;  %vm245_vm3 = vweird.f32 %v62_v35 }
  0x92   :  { %v231_v38 = vmul.f32 %v406_v36, %v230_v37 }
  0x94   :  { %v232_v40 = vmul.f32 0.5, %v231_v38 }
  0x96   :  { %v233_v42 = vsub.f32 1.5, %v232_v40 }
  0x97   :  { %v408_v39 = vpop.eup %407 }
  0x98   :  { %v240_v41 = vmul.f32 %v408_v39, %v62_v35  ;;  %v234_v45 = vmul.f32 %v406_v36, %v233_v42  ;;  %vm246_vm4 = vweird.f32 %v408_v39 }
  0x99   :  { %vm247_vm5 = vmor %vm245_vm3, %vm246_vm4 }
  0x9a   :  { %v241_v43 = vmul.f32 %v408_v39, %v240_v41  ;;  %v238_v51 = vsel %vm237_vm2, %v406_v36, %v234_v45 }
  0x9c   :  { %v242_v44 = vmul.f32 0.5, %v241_v43 }
  0x9e   :  { %v243_v50 = vsub.f32 1.5, %v242_v44 }
  0xa0   :  { %v244_v54 = vmul.f32 %v408_v39, %v243_v50 }
  0xa2   :  { %v248_v59 = vsel %vm247_vm5, %v408_v39, %v244_v54 }
  0xa9   :  { %v210_v46 = vpop.f32.mrf.mxu0 }
  0xaa   :  { %v224_v47 = vpop.f32.mrf.mxu1 }
  0xab   :  { %v225_v48 = vadd.f32 %v224_v47, %v210_v46 }
  0xad   :  { %v249_v52 = vmul.f32 %v238_v51, %v225_v48 }
  0xaf   :  { %v255_v53 = vadd.f32 %v404_v49, %v249_v52 }
  0xb1   :  { %v257_v55 = vmul.f32 %v255_v53, %v255_v53  ;;  %v212_v56 = vpop.f32.mrf.mxu0 }
  0xb2   :  { %v226_v57 = vpop.f32.mrf.mxu1 }
  0xb3   :  { %v227_v58 = vadd.f32 %v226_v57, %v212_v56  ;;  %259 = vadd.xlane.f32.xlu1 %v257_v55 }
  0xb5   :  { %v250_v60 = vmul.f32 %v248_v59, %v227_v58 }
  0xb7   :  { %v256_v61 = vadd.f32 %v404_v49, %v250_v60 }
  0xb9   :  { %v258_v62 = vmul.f32 %v256_v61, %v256_v61 }
  0xbb   :  { %261 = vadd.xlane.f32.xlu1 %v258_v62 }
 0x126   :  { %v260_v63 = vpop.xlane.xlu1 %259 }
 0x127   :  { %409 = vrsqrt.f32 %v260_v63  ;;  %vm269_vm7 = vweird.f32 %v260_v63 }
 0x12d   :  { %v410_v0 = vpop.eup %409 }
 0x12e   :  { %v264_v1 = vmul.f32 %v410_v0, %v260_v63  ;;  %v262_v2 = vpop.xlane.xlu1 %261  ;;  %vm270_vm6 = vweird.f32 %v410_v0 }
 0x12f   :  { %411 = vrsqrt.f32 %v262_v2  ;;  %vm271_vm8 = vmor %vm269_vm7, %vm270_vm6  ;;  %vm279_vm10 = vweird.f32 %v262_v2 }
 0x130   :  { %v265_v3 = vmul.f32 %v410_v0, %v264_v1 }
 0x132   :  { %v266_v4 = vmul.f32 0.5, %v265_v3 }
 0x134   :  { %v267_v5 = vsub.f32 1.5, %v266_v4 }
 0x135   :  { %v412_v6 = vpop.eup %411 }
 0x136   :  { %v268_v7 = vmul.f32 %v410_v0, %v267_v5  ;;  %v274_v8 = vmul.f32 %v412_v6, %v262_v2  ;;  %vm280_vm9 = vweird.f32 %v412_v6 }
 0x137   :  { %vm281_vm11 = vmor %vm279_vm10, %vm280_vm9 }
 0x138   :  { %v272_v9 = vsel %vm271_vm8, %v410_v0, %v268_v7  ;;  %v275_v10 = vmul.f32 %v412_v6, %v274_v8 }
 0x139   :  { %v283_v11 = vmul.f32 %v272_v9, %v255_v53 }
 0x13a   :  { %v276_v12 = vmul.f32 0.5, %v275_v10 }
 0x13b   :  { %285 = vst [vmem:[#allocation7] sm:$0xff] %v283_v11 }
 0x13c   :  { %v277_v13 = vsub.f32 1.5, %v276_v12 }
 0x13e   :  { %v278_v14 = vmul.f32 %v412_v6, %v277_v13 }
 0x140   :  { %v282_v15 = vsel %vm281_vm11, %v412_v6, %v278_v14 }
 0x141   :  { %v284_v16 = vmul.f32 %v282_v15, %v256_v61 }
 0x143   :  { %286 = vst [vmem:[#allocation7 + $0x8] sm:$0xff] %v284_v16 }
 0x144   :  { %299 = dma.vmem_to_hbm [thread:$0]  %s292_s26, 256, %s294_s29, [#allocation4], %s492_s20, %s492_s20, %s493_s21  }
 0x145   :  { %489 = dma.done.wait [#allocation4], 256  }
 0x146   :  { %490 = vsyncadd [#allocation4], 4294967040 }
 0x147   :  { %304 = vsyncpa [#allocation3], 1 }
 0x148   :  { %305 = vsyncpa [#allocation6], 1 }
 0x149   :  { %306 = vsyncpa [#allocation4], 1 }

// kernel: tpu_custom_call.1
= control target key start
LH: loop header
LB: loop body
LE: loop exit
PB: predicated region body
PF: predicated region fallthrough
CT: control target
= control target key end

     0   :  { %8 = vsyncpa [#allocation3], 0  ;;  %s536_s0 = inlined_call_operand.hbm [shape: bf16[16,256], index: 0, kind: input, shape index: {}]   ;;  %s537_s1 = inlined_call_operand.hbm [shape: bf16[256,128], index: 1, kind: input, shape index: {}]   ;;  %s538_s2 = inlined_call_operand.vmem [shape: f32[1,128], index: 2, kind: input, shape index: {}]   ;;  %s539_s3 = inlined_call_operand.hbm [shape: f32[16,128], index: 3, kind: output, shape index: {}]  }
   0x1   :  { %9 = vsyncpa [#allocation6], 0 }
   0x2   :  { %10 = vsyncpa [#allocation4], 0  ;;  %s15_s14 = sshll.u32 %s536_s0, 4  ;;  %s491_s15 = smov [#allocation2]   ;;  %s16_s14 = int_to_ptr.hbm [resolvable:$true] %s15_s14 }
   0x3   :  { %s17_s16 = sshll.u32 %s491_s15, 4  ;;  %s28_s19 = sshll.u32 %s537_s1, 4  ;;  %s18_s16 = int_to_ptr.vmem [resolvable:$true] %s17_s16  ;;  %s29_s19 = int_to_ptr.hbm [resolvable:$true] %s28_s19 }
   0x4   :  { %s492_s20 = smov 128   ;;  %s493_s21 = smov 8  }
   0x5   :  { %23 = dma.hbm_to_vmem [thread:$0]  %s16_s14, 256, %s18_s16, [#allocation3], %s492_s20, %s492_s20, %s493_s21  }
   0x6   :  { %s494_s22 = smov [#allocation5]   ;;  %s495_s24 = smov 64  }
   0x7   :  { %s30_s23 = sshll.u32 %s494_s22, 4  ;;  %s496_s0 = smov 4   ;;  %s31_s23 = int_to_ptr.vmem [resolvable:$true] %s30_s23 }
   0x8   :  { %36 = dma.hbm_to_vmem [thread:$0]  %s29_s19, 2048, %s31_s23, [#allocation6], %s495_s24, %s495_s24, %s496_s0  }
   0x9   :  { %485 = dma.done.wait [#allocation3], 256  }
   0xa   :  { %486 = vsyncadd [#allocation3], 4294967040 }
   0xb   :  { %487 = dma.done.wait [#allocation6], 2048  }
   0xc   :  { %488 = vsyncadd [#allocation6], 4294965248  ;;  %v388_v0 = vld [vmem:[#allocation5 + $0x38] sm:$0xff]  ;;  %v387_v2 = vld [vmem:[#allocation5 + $0x30] sm:$0xff]  ;;  %s293_s29 = sshll.u32 %s539_s3, 4  ;;  %s294_s29 = int_to_ptr.hbm [resolvable:$true] %s293_s29 }
   0xd   :  { %v396_v1 = vld [vmem:[#allocation5 + $0x78] sm:$0xff]  ;;  %201 = vmatpush.bf16.msra.mxu0 %v388_v0  ;;  %v395_v3 = vld [vmem:[#allocation5 + $0x70] sm:$0xff]  ;;  %v386_v12 = vld [vmem:[#allocation5 + $0x28] sm:$0xff] }
   0xe   :  { %215 = vmatpush.bf16.msra.mxu1 %v396_v1  ;;  %v47_v4 = vld [vmem:[#allocation2] sm:$0xff]  ;;  %v48_v7 = vld [vmem:[#allocation2 + $0x8] sm:$0xff]  ;;  %v394_v13 = vld [vmem:[#allocation5 + $0x68] sm:$0xff] }
   0xf   :  { %v49_v5 = vunpack.c.l.bf16 %v47_v4  ;;  %v50_v6 = vunpack.c.h.bf16 %v47_v4  ;;  %v51_v10 = vunpack.c.l.bf16 %v48_v7  ;;  %v52_v11 = vunpack.c.h.bf16 %v48_v7  ;;  %v385_v17 = vld [vmem:[#allocation5 + $0x20] sm:$0xff]  ;;  %v384_v20 = vld [vmem:[#allocation5 + $0x18] sm:$0xff]  ;;  %v383_v22 = vld [vmem:[#allocation5 + $0x10] sm:$0xff] }
  0x10   :  { %v393_v18 = vld [vmem:[#allocation5 + $0x60] sm:$0xff]  ;;  %v392_v21 = vld [vmem:[#allocation5 + $0x58] sm:$0xff]  ;;  %v391_v23 = vld [vmem:[#allocation5 + $0x50] sm:$0xff] }
  0x11   :  { %v53_v8 = vmul.f32 %v49_v5, %v49_v5  ;;  %v54_v9 = vmul.f32 %v50_v6, %v50_v6  ;;  %202 = vmatpush.bf16.msra.mxu0 %v387_v2  ;;  %v55_v15 = vmul.f32 %v51_v10, %v51_v10  ;;  %v56_v16 = vmul.f32 %v52_v11, %v52_v11  ;;  %v382_v24 = vld [vmem:[#allocation5 + $0x8] sm:$0xff]  ;;  %v381_v26 = vld [vmem:[#allocation5] sm:$0xff]  ;;  %v309_v28 = vld [vmem:[#allocation2] sm:$0xf] }
  0x12   :  { %216 = vmatpush.bf16.msra.mxu1 %v395_v3  ;;  %v390_v25 = vld [vmem:[#allocation5 + $0x48] sm:$0xff]  ;;  %v389_v27 = vld [vmem:[#allocation5 + $0x40] sm:$0xff]  ;;  %v380_v29 = vld [vmem:[#allocation2 + $0x4] sm:$0xf0] }
  0x13   :  { %v57_v14 = vadd.f32 %v54_v9, %v53_v8  ;;  %v60_v19 = vadd.f32 %v56_v16, %v55_v15  ;;  %v379_v30 = vld [vmem:[#allocation2 + $0x4] sm:$0xf]  ;;  %v311_v31 = vld [vmem:[#allocation2 + $0x8] sm:$0xf0]  ;;  %v310_v32 = vor.u32 %v380_v29, %v309_v28  ;;  %v404_v49 = vld [vmem:[%s538_s2] ss:$0 sm:$0xff] }
  0x14   :  { %v314_v33 = vor.u32 %v379_v30, %v311_v31  ;;  %s497_s2 = smov [#allocation7]  }
  0x15   :  { %58 = vadd.xlane.f32.xlu0 %v57_v14  ;;  %203 = vmatpush.bf16.msra.mxu0 %v386_v12  ;;  %s291_s26 = sshll.u32 %s497_s2, 4  ;;  %s292_s26 = int_to_ptr.vmem [resolvable:$true] %s291_s26 }
  0x16   :  { %217 = vmatpush.bf16.msra.mxu1 %v394_v13 }
  0x19   :  { %204 = vmatpush.bf16.msra.mxu0 %v385_v17 }
  0x1a   :  { %218 = vmatpush.bf16.msra.mxu1 %v393_v18 }
  0x1d   :  { %61 = vadd.xlane.f32.xlu0 %v60_v19  ;;  %205 = vmatpush.bf16.msra.mxu0 %v384_v20 }
  0x1e   :  { %219 = vmatpush.bf16.msra.mxu1 %v392_v21 }
  0x21   :  { %206 = vmatpush.bf16.msra.mxu0 %v383_v22 }
  0x22   :  { %220 = vmatpush.bf16.msra.mxu1 %v391_v23 }
  0x25   :  { %207 = vmatpush.bf16.msra.mxu0 %v382_v24 }
  0x26   :  { %221 = vmatpush.bf16.msra.mxu1 %v390_v25 }
  0x29   :  { %208 = vmatpush.bf16.msra.mxu0 %v381_v26 }
  0x2a   :  { %222 = vmatpush.bf16.msra.mxu1 %v389_v27 }
  0x2c   :  { %209 = vmatmul.bf16.vlgmr.msra.gmra.mxu0 %v310_v32 }
  0x2d   :  { %223 = vmatmul.bf16.vlgmr.msra.gmra.mxu1 %v314_v33 }
  0x88   :  { %v59_v34 = vpop.xlane.xlu0 %58 }
  0x89   :  { %405 = vrsqrt.f32 %v59_v34  ;;  %vm235_vm0 = vweird.f32 %v59_v34 }
  0x8f   :  { %v406_v36 = vpop.eup %405 }
  0x90   :  { %v62_v35 = vpop.xlane.xlu0 %61  ;;  %v230_v37 = vmul.f32 %v406_v36, %v59_v34  ;;  %vm236_vm1 = vweird.f32 %v406_v36 }
  0x91   :  { %407 = vrsqrt.f32 %v62_v35  ;;  %vm237_vm2 = vmor %vm235_vm0, %vm236_vm1  ;;  %vm245_vm3 = vweird.f32 %v62_v35 }
  0x92   :  { %v231_v38 = vmul.f32 %v406_v36, %v230_v37 }
  0x94   :  { %v232_v40 = vmul.f32 0.5, %v231_v38 }
  0x96   :  { %v233_v42 = vsub.f32 1.5, %v232_v40 }
  0x97   :  { %v408_v39 = vpop.eup %407 }
  0x98   :  { %v240_v41 = vmul.f32 %v408_v39, %v62_v35  ;;  %v234_v45 = vmul.f32 %v406_v36, %v233_v42  ;;  %vm246_vm4 = vweird.f32 %v408_v39 }
  0x99   :  { %vm247_vm5 = vmor %vm245_vm3, %vm246_vm4 }
  0x9a   :  { %v241_v43 = vmul.f32 %v408_v39, %v240_v41  ;;  %v238_v51 = vsel %vm237_vm2, %v406_v36, %v234_v45 }
  0x9c   :  { %v242_v44 = vmul.f32 0.5, %v241_v43 }
  0x9e   :  { %v243_v50 = vsub.f32 1.5, %v242_v44 }
  0xa0   :  { %v244_v54 = vmul.f32 %v408_v39, %v243_v50 }
  0xa2   :  { %v248_v59 = vsel %vm247_vm5, %v408_v39, %v244_v54 }
  0xa9   :  { %v210_v46 = vpop.f32.mrf.mxu0 }
  0xaa   :  { %v224_v47 = vpop.f32.mrf.mxu1 }
  0xab   :  { %v225_v48 = vadd.f32 %v224_v47, %v210_v46 }
  0xad   :  { %v249_v52 = vmul.f32 %v238_v51, %v225_v48 }
  0xaf   :  { %v255_v53 = vadd.f32 %v404_v49, %v249_v52 }
  0xb1   :  { %v257_v55 = vmul.f32 %v255_v53, %v255_v53  ;;  %v212_v56 = vpop.f32.mrf.mxu0 }
  0xb2   :  { %v226_v57 = vpop.f32.mrf.mxu1 }
  0xb3   :  { %v227_v58 = vadd.f32 %v226_v57, %v212_v56  ;;  %259 = vadd.xlane.f32.xlu1 %v257_v55 }
  0xb5   :  { %v250_v60 = vmul.f32 %v248_v59, %v227_v58 }
  0xb7   :  { %v256_v61 = vadd.f32 %v404_v49, %v250_v60 }
  0xb9   :  { %v258_v62 = vmul.f32 %v256_v61, %v256_v61 }
  0xbb   :  { %261 = vadd.xlane.f32.xlu1 %v258_v62 }
 0x126   :  { %v260_v63 = vpop.xlane.xlu1 %259 }
 0x127   :  { %409 = vrsqrt.f32 %v260_v63  ;;  %vm269_vm7 = vweird.f32 %v260_v63 }
 0x12d   :  { %v410_v0 = vpop.eup %409 }
 0x12e   :  { %v264_v1 = vmul.f32 %v410_v0, %v260_v63  ;;  %v262_v2 = vpop.xlane.xlu1 %261  ;;  %vm270_vm6 = vweird.f32 %v410_v0 }
 0x12f   :  { %411 = vrsqrt.f32 %v262_v2  ;;  %vm271_vm8 = vmor %vm269_vm7, %vm270_vm6  ;;  %vm279_vm10 = vweird.f32 %v262_v2 }
 0x130   :  { %v265_v3 = vmul.f32 %v410_v0, %v264_v1 }
 0x132   :  { %v266_v4 = vmul.f32 0.5, %v265_v3 }
 0x134   :  { %v267_v5 = vsub.f32 1.5, %v266_v4 }
 0x135   :  { %v412_v6 = vpop.eup %411 }
 0x136   :  { %v268_v7 = vmul.f32 %v410_v0, %v267_v5  ;;  %v274_v8 = vmul.f32 %v412_v6, %v262_v2  ;;  %vm280_vm9 = vweird.f32 %v412_v6 }
 0x137   :  { %vm281_vm11 = vmor %vm279_vm10, %vm280_vm9 }
 0x138   :  { %v272_v9 = vsel %vm271_vm8, %v410_v0, %v268_v7  ;;  %v275_v10 = vmul.f32 %v412_v6, %v274_v8 }
 0x139   :  { %v283_v11 = vmul.f32 %v272_v9, %v255_v53 }
 0x13a   :  { %v276_v12 = vmul.f32 0.5, %v275_v10 }
 0x13b   :  { %285 = vst [vmem:[#allocation7] sm:$0xff] %v283_v11 }
 0x13c   :  { %v277_v13 = vsub.f32 1.5, %v276_v12 }
 0x13e   :  { %v278_v14 = vmul.f32 %v412_v6, %v277_v13 }
 0x140   :  { %v282_v15 = vsel %vm281_vm11, %v412_v6, %v278_v14 }
 0x141   :  { %v284_v16 = vmul.f32 %v282_v15, %v256_v61 }
 0x143   :  { %286 = vst [vmem:[#allocation7 + $0x8] sm:$0xff] %v284_v16 }
 0x144   :  { %299 = dma.vmem_to_hbm [thread:$0]  %s292_s26, 256, %s294_s29, [#allocation4], %s492_s20, %s492_s20, %s493_s21  }
 0x145   :  { %489 = dma.done.wait [#allocation4], 256  }
 0x146   :  { %490 = vsyncadd [#allocation4], 4294967040 }
 0x147   :  { %304 = vsyncpa [#allocation3], 1 }
 0x148   :  { %305 = vsyncpa [#allocation6], 1 }
 0x149   :  { %306 = vsyncpa [#allocation4], 1 }

</bundles_post_ra>
